<compile_context>
chip_gen: v7x
topology: tpu7x:2x2x1
jax: 0.10.0
libtpu: 0.0.40
codegen_flags: <defaults>
</compile_context>

<pallas_src>
import functools
import warnings

import jax
import jax.numpy as jnp
from jax.experimental import pallas as pl
from jax.experimental.pallas import tpu as pltpu


# --------------------------------------------------------------------------- #
# Kernel body
# --------------------------------------------------------------------------- #
def _filter_sketch_copy_kernel(x_ref, o_ref):
    # TODO(synk): FilterSketch.forward is @abstractmethod in the reference
    # module -- no concrete sketching math is defined, so the faithful lowering
    # is an identity tile copy. Concrete subclasses would insert their sketch
    # compute here (the streaming-tile pipeline around it stays valid).
    o_ref[...] = x_ref[...]


# --------------------------------------------------------------------------- #
# Tiling helpers
# --------------------------------------------------------------------------- #
_FALLBACK_VMEM_BYTES = 64 * 1024 * 1024  # most conservative: v7x per-TC VMEM


def _vmem_capacity_bytes() -> int:
    """Per-generation VMEM capacity (v5e/v6e: 128 MiB, v7x: 64 MiB)."""
    try:
        cap = int(getattr(pltpu.get_tpu_info(), "vmem_capacity_bytes", 0))
        if cap > 0:
            return cap
    except Exception:
        pass
    return _FALLBACK_VMEM_BYTES


def _round_up(v: int, m: int) -> int:
    return -(-v // m) * m


def _pick_lane(total: int):
    """Largest lane-dense width dividing `total`; else pad to a fixed lane."""
    for lane in (8192, 4096, 2048, 1024, 512, 256, 128):
        if total % lane == 0:
            return lane, False
    # Non-128-divisible element count: pad the flattened array up to `lane`.
    return 512, True


def _sublane_multiple(itemsize: int) -> int:
    """Sublane granularity that keeps packed dtypes (bf16/int8) happy."""
    return max(8, 32 // max(itemsize, 1))


def _pick_row_tile(rows: int, lane: int, itemsize: int,
                   tile_budget_bytes: int, sub: int) -> int:
    if rows <= sub:
        return rows  # tiny input: single full-extent block
    # Budget-driven tile height (big tiles amortize the ~600-cycle step cost).
    tr = (tile_budget_bytes // (lane * itemsize)) // sub * sub
    tr = max(sub, min(tr, _round_up(rows, sub)))
    # Guarantee a multi-tile grid so the "parallel" axis can be split across
    # v7x's 2 TensorCores (and the DMA pipeline has something to overlap).
    want_tiles = 8 if rows >= 8 * sub else 2
    cap = max(sub, _round_up(pl.cdiv(rows, want_tiles), sub))
    return min(tr, cap)


# --------------------------------------------------------------------------- #
# Forward implementation
# --------------------------------------------------------------------------- #
def _forward_impl(x: jax.Array, *, alias_in_out: bool) -> jax.Array:
    if x.size == 0:
        return x

    orig_shape, dtype = x.shape, x.dtype
    itemsize = jnp.dtype(dtype).itemsize
    total = int(x.size)

    lane, need_pad = _pick_lane(total)
    flat = x.reshape(-1)
    padded_total = pl.cdiv(total, lane) * lane
    if need_pad:
        flat = jnp.pad(flat, (0, padded_total - total))
    rows = padded_total // lane
    x2 = flat.reshape(rows, lane)  # lane-dense 2D view (bitcast under jit)

    # Per-generation VMEM sizing: 48 MiB scoped limit on v7x (64 MiB physical),
    # 64 MiB on v5e/v6e (128 MiB physical); ~1/6 of the limit per tile buffer
    # leaves room for in+out double-buffering (4 live tiles) plus scratch.
    vmem_cap = _vmem_capacity_bytes()
    vmem_limit = min(vmem_cap * 3 // 4, 64 * 1024 * 1024)
    tile_budget = vmem_limit // 6

    sub = _sublane_multiple(itemsize)
    tr = _pick_row_tile(rows, lane, itemsize, tile_budget, sub)
    grid = (pl.cdiv(rows, tr),)  # masked boundary tile handles ragged rows

    y2 = pl.pallas_call(
        _filter_sketch_copy_kernel,
        out_shape=jax.ShapeDtypeStruct((rows, lane), dtype),
        grid=grid,
        in_specs=[pl.BlockSpec((tr, lane), lambda i: (i, 0))],
        out_specs=pl.BlockSpec((tr, lane), lambda i: (i, 0)),
        # Aliasing is only real when the caller donates the input (otherwise
        # XLA inserts a defensive copy that *adds* HBM traffic).
        input_output_aliases=({0: 0} if alias_in_out else {}),
        compiler_params=pltpu.CompilerParams(
            dimension_semantics=("parallel",),  # shardable across v7x's 2 TCs
            vmem_limit_bytes=vmem_limit,
        ),
    )(x2)

    out = y2.reshape(-1)
    if need_pad:
        out = out[:total]
    return out.reshape(orig_shape)


@jax.jit
def filter_sketch_forward(x: jax.Array) -> jax.Array:
    """Out-of-place FilterSketch.forward (abstract -> identity contract)."""
    return _forward_impl(x, alias_in_out=False)


@functools.partial(jax.jit, donate_argnums=0)
def filter_sketch_forward_inplace(x: jax.Array) -> jax.Array:
    """In-place variant: caller donates `x`, pallas_call aliases out <- in."""
    return _forward_impl(x, alias_in_out=True)


class FilterSketchJAX:
    """Mirror of the (parameter-free) PyTorch module's __init__/forward shape."""

    def __init__(self, *, identity_short_circuit: bool = False,
                 donate_input: bool = False):
        # Reference __init__ creates no parameters; nothing to initialize.
        self.identity_short_circuit = identity_short_circuit
        self.donate_input = donate_input

    def __call__(self, inputs: jax.Array) -> jax.Array:
        if self.identity_short_circuit:
            # Highest-value option from the perf review: the abstract forward's
            # contract is identity, so returning the input does zero HBM work.
            return inputs
        if self.donate_input:
            return filter_sketch_forward_inplace(inputs)
        return filter_sketch_forward(inputs)


if __name__ == "__main__":
    key = jax.random.PRNGKey(0)
    # Small NCHW input consistent with a conv-style module: batch=2, channels=4,
    # spatial=16x16 -> 2048 elements -> lane-dense (1, 2048) view.
    x = jax.random.normal(key, (2, 4, 16, 16), dtype=jnp.float32)

    # Default path: out-of-place streaming copy (no aliasing, no donation).
    module = FilterSketchJAX()
    y = jax.block_until_ready(module(x))
    assert y.shape == x.shape and y.dtype == x.dtype
    assert bool(jnp.allclose(y, x))

    # Production fast path: donated input + in-kernel aliasing.
    x_donor = jnp.array(x)  # fresh buffer we are free to give up
    with warnings.catch_warnings():
        warnings.simplefilter("ignore")  # benign "donated buffer" notices
        y2 = jax.block_until_ready(filter_sketch_forward_inplace(x_donor))
    assert y2.shape == x.shape and y2.dtype == x.dtype
    assert bool(jnp.allclose(y2, x))

    print("KERNEL_OK")
</pallas_src>

<mosaic_0001>
module attributes {stable_mosaic.version = 11 : i64} {
  func.func @_filter_sketch_copy_kernel(%arg0: i32, %arg1: memref<1x2048xf32, #tpu.memory_space<vmem>>, %arg2: memref<1x2048xf32, #tpu.memory_space<vmem>>) attributes {dimension_semantics = [#tpu.dimension_semantics<parallel>], iteration_bounds = array<i64: 1>, scalar_prefetch = 0 : i64, scratch_operands = 0 : i64, tpu.core_type = #tpu.core_type<tc>, window_params = [{transform_indices = @transform_0, window_bounds = array<i64: 1, 2048>}, {transform_indices = @transform_1, window_bounds = array<i64: 1, 2048>}]} {
    %c0 = arith.constant 0 : index
    %c0_0 = arith.constant 0 : index
    %0 = vector.load %arg1[%c0, %c0_0] : memref<1x2048xf32, #tpu.memory_space<vmem>>, vector<1x2048xf32>
    %c0_1 = arith.constant 0 : index
    %c0_2 = arith.constant 0 : index
    %1 = vector.load %arg2[%c0_1, %c0_2] : memref<1x2048xf32, #tpu.memory_space<vmem>>, vector<1x2048xf32>
    tpu.vector_store %arg2[%c0_1, %c0_2], %0 {strides = array<i32>} : memref<1x2048xf32, #tpu.memory_space<vmem>>, vector<1x2048xf32>,
    return
  }
  func.func @transform_0(%arg0: i32) -> (i32, i32) {
    %c0_i32 = arith.constant 0 : i32
    %c0_i32_0 = arith.constant 0 : i32
    return %arg0, %c0_i32 : i32, i32
  }
  func.func @transform_1(%arg0: i32) -> (i32, i32) {
    %c0_i32 = arith.constant 0 : i32
    %c0_i32_0 = arith.constant 0 : i32
    return %arg0, %c0_i32 : i32, i32
  }
}

</mosaic_0001>

<bundles_post_ra>
// kernel: filter_sketch_forward.1
= control target key start
LH: loop header
LB: loop body
LE: loop exit
PB: predicated region body
PF: predicated region fallthrough
CT: control target
= control target key end

     0   :  { %s38_s0 = inlined_call_operand.vmem [shape: f32[1,2048], index: 0, kind: input, shape index: {}]   ;;  %s39_s1 = inlined_call_operand.vmem [shape: f32[1,2048], index: 1, kind: output, shape index: {}]  }
   0x1   :  { %v8_v0 = vld [vmem:[%s38_s0] sm:$0xff]  ;;  %v9_v1 = vld [vmem:[%s38_s0 + $0x8] sm:$0xff] }
   0x2   :  { %10 = vst [vmem:[%s39_s1] sm:$0xff] %v8_v0  ;;  %11 = vst [vmem:[%s39_s1 + $0x8] sm:$0xff] %v9_v1 }

</bundles_post_ra>
